<compile_context>
chip_gen: v5e
topology: v5e:2x2
jax: 0.10.0
libtpu: 0.0.40
codegen_flags: <defaults>
</compile_context>

<pallas_src>
import functools

import jax
import jax.numpy as jnp
from jax.experimental import pallas as pl
from jax.experimental.pallas import tpu as pltpu


def _patch_embed_kernel(x_ref, w_ref, b_ref, o_ref):
    # x_ref: (TM, K) streamed patch tile; w_ref: (K, D) resident weight;
    # b_ref: (1, D) f32 bias; o_ref: (TM, D) output tile.
    acc = jnp.dot(x_ref[...], w_ref[...], preferred_element_type=jnp.float32)
    o_ref[...] = (acc + b_ref[...]).astype(o_ref.dtype)


def _sublane_multiple(dtype) -> int:
    # Native sublane tiling: f32 -> 8, bf16/f16 -> 16, int8/fp8 -> 32 rows.
    return {4: 8, 2: 16, 1: 32}.get(jnp.dtype(dtype).itemsize, 8)


def _pick_tile_m(m: int, cap: int, sub: int):
    """Largest TM <= cap that divides m and is a sublane multiple (or TM == m)."""
    if m <= cap:
        return m, True                      # full-extent block: always legal
    for d in range(min(cap, m), 0, -1):
        if m % d == 0 and d % sub == 0:
            return d, True
    # Rare fallback: no suitable divisor -> ragged last tile (Pallas clips the
    # out-of-bounds rows on writeback; padded garbage rows never reach HBM).
    return max(sub, (cap // sub) * sub), False


def patch_embedding(x, weight, bias, patch_size, *,
                    compute_dtype=jnp.bfloat16, out_dtype=None,
                    tile_m=1024, vmem_limit_bytes=None):
    """ViT patch embedding.

    x: (B, C, H, W) NCHW; weight: (D, C, P, P); bias: (D,). Returns (B, N, D),
    identical to `Conv2d(C, D, P, stride=P)(x).flatten(2).transpose(1, 2)`.

    compute_dtype: MXU input dtype (default bf16; accumulation and the bias add
    stay in f32). compute_dtype=jnp.float32 gives exact parity with the conv.
    out_dtype: output store dtype (default: x.dtype).
    """
    B, C, H, W = x.shape
    P = int(patch_size)
    nh, nw = H // P, W // P
    N = nh * nw
    D = int(weight.shape[0])
    K = C * P * P
    M = B * N

    compute_dtype = jnp.dtype(compute_dtype if compute_dtype is not None else x.dtype)
    out_dtype = jnp.dtype(out_dtype if out_dtype is not None else x.dtype)

    # ---- Patchify: (B, C, H, W) -> (M, K), per-patch flatten order (c, ph, pw).
    # Cast to the compute dtype *before* the transpose so any materialized
    # rearrangement pass moves compute-dtype (usually bf16) bytes, not f32.
    patches = (
        x.astype(compute_dtype)
        .reshape(B, C, nh, P, nw, P)
        .transpose(0, 2, 4, 1, 3, 5)          # (B, nh, nw, C, P, P)
        .reshape(M, K)
    )
    w2 = weight.reshape(D, K).T.astype(compute_dtype)   # (K, D) — tiny transform
    b2 = bias.reshape(1, D).astype(jnp.float32)         # f32 bias add in-kernel

    # ---- Row tiling. Never pad M/K/D: K and D blocks equal the full dims
    # (legal even when not 128-aligned); TM divides M whenever possible.
    sub = max(_sublane_multiple(compute_dtype), _sublane_multiple(out_dtype))
    cd_b = compute_dtype.itemsize
    out_b = out_dtype.itemsize
    fixed = K * D * cd_b + D * 4                    # single-buffered weight + bias
    per_row = 2 * K * cd_b + 2 * D * out_b          # double-buffered in/out tiles
    budget = 36 << 20                               # fits v5e/v6e/v7x once limit raised
    tm_cap = min(int(tile_m), max(sub, (budget - fixed) // per_row))
    tm_cap = min(tm_cap, max(sub, -(-M // 8)))      # >= ~8 grid steps for v7x megacore
    TM, exact = _pick_tile_m(M, tm_cap, sub)
    grid = (M // TM,) if exact else (pl.cdiv(M, TM),)

    if vmem_limit_bytes is None:
        need = fixed + TM * per_row
        vmem_limit_bytes = int(min(max(need + (8 << 20), 32 << 20), 56 << 20))

    cost = pl.CostEstimate(
        flops=2 * M * K * D,
        transcendentals=0,
        bytes_accessed=M * K * cd_b + K * D * cd_b + D * 4 + M * D * out_b,
    )

    out = pl.pallas_call(
        _patch_embed_kernel,
        out_shape=jax.ShapeDtypeStruct((M, D), out_dtype),
        grid=grid,
        in_specs=[
            # Streamed activation tiles (default double-buffering).
            pl.BlockSpec((TM, K), lambda i: (i, 0)),
            # Grid-invariant weight / bias: VMEM-resident, single-buffered.
            pl.BlockSpec((K, D), lambda i: (0, 0), pipeline_mode=pl.Buffered(1)),
            pl.BlockSpec((1, D), lambda i: (0, 0), pipeline_mode=pl.Buffered(1)),
        ],
        out_specs=pl.BlockSpec((TM, D), lambda i: (i, 0)),
        compiler_params=pltpu.CompilerParams(
            dimension_semantics=("parallel",),
            allow_input_fusion=[True, False, False],
            vmem_limit_bytes=vmem_limit_bytes,
        ),
        cost_estimate=cost,
    )(patches, w2, b2)

    # No padding was applied, so this reshape is a free metadata-only view.
    return out.reshape(B, N, D)


def patchify_fusion_hlo(x, weight, bias, patch_size, **kwargs):
    """Offline check (per perf review): return compiled-HLO lines mentioning
    transpose/fusion so one can confirm the XLA-side patchify fuses into the
    Pallas custom-call operand instead of materializing an extra HBM pass.
    Not called by the smoke test below (keeps stdout to exactly KERNEL_OK)."""
    fn = jax.jit(functools.partial(patch_embedding, patch_size=patch_size, **kwargs))
    hlo = fn.lower(x, weight, bias).compile().as_text()
    return [l for l in hlo.splitlines() if ("transpose" in l or "fusion" in l)]


def reference_patch_embedding(x, weight, bias, patch_size):
    """Pure-JAX reference: conv2d with stride=kernel, then flatten + transpose."""
    y = jax.lax.conv_general_dilated(
        x, weight,
        window_strides=(patch_size, patch_size),
        padding="VALID",
        dimension_numbers=("NCHW", "OIHW", "NCHW"),
        precision=jax.lax.Precision.HIGHEST,
    )
    y = y + bias.reshape(1, -1, 1, 1)
    B, D, nh, nw = y.shape
    return y.reshape(B, D, nh * nw).transpose(0, 2, 1)


if __name__ == "__main__":
    # Small shapes consistent with the module: image 16x16, patch 4, C=4, D=32.
    batch, in_channels, image_size, patch_size, embed_dim = 2, 4, 16, 4, 32

    key = jax.random.PRNGKey(0)
    kx, kw, kb = jax.random.split(key, 3)
    x = jax.random.normal(kx, (batch, in_channels, image_size, image_size), jnp.float32)
    # Deterministic synthetic Conv2d params (shapes per nn.Conv2d(C, D, P, stride=P)).
    fan_in = in_channels * patch_size * patch_size
    bound = 1.0 / (fan_in ** 0.5)
    weight = jax.random.uniform(kw, (embed_dim, in_channels, patch_size, patch_size),
                                jnp.float32, -bound, bound)
    bias = jax.random.uniform(kb, (embed_dim,), jnp.float32, -bound, bound)

    N = (image_size // patch_size) ** 2
    ref = reference_patch_embedding(x, weight, bias, patch_size)

    pe_exact = jax.jit(functools.partial(
        patch_embedding, patch_size=patch_size, compute_dtype=jnp.float32))
    pe_fast = jax.jit(functools.partial(patch_embedding, patch_size=patch_size))
    pe_bf16_out = jax.jit(functools.partial(
        patch_embedding, patch_size=patch_size, out_dtype=jnp.bfloat16))

    # f32 MXU feed: exact (to fp tolerance) vs the conv reference.
    out_f32 = jax.block_until_ready(pe_exact(x, weight, bias))
    assert out_f32.shape == (batch, N, embed_dim), out_f32.shape
    assert jnp.allclose(out_f32, ref, atol=1e-5, rtol=1e-5), "f32 mismatch vs reference"

    # Default path: bf16 MXU feeds, f32 accumulation + f32 bias, output in x.dtype.
    out_def = jax.block_until_ready(pe_fast(x, weight, bias))
    assert out_def.shape == (batch, N, embed_dim) and out_def.dtype == x.dtype
    assert jnp.allclose(out_def, ref, atol=2e-2, rtol=2e-2), "bf16 mismatch vs reference"

    # bf16 output store (halves writeback bytes for bf16 pipelines).
    out_bf = jax.block_until_ready(pe_bf16_out(x, weight, bias))
    assert out_bf.dtype == jnp.bfloat16
    assert jnp.allclose(out_bf.astype(jnp.float32), ref, atol=3e-2, rtol=3e-2), \
        "bf16-out mismatch vs reference"

    print("KERNEL_OK")
</pallas_src>

<mosaic_0001>
module attributes {stable_mosaic.version = 11 : i64} {
  func.func @_patch_embed_kernel(%arg0: i32, %arg1: memref<8x64xf32, #tpu.memory_space<vmem>>, %arg2: memref<64x32xf32, #tpu.memory_space<vmem>>, %arg3: memref<1x32xf32, #tpu.memory_space<vmem>>, %arg4: memref<8x32xf32, #tpu.memory_space<vmem>>) attributes {dimension_semantics = [#tpu.dimension_semantics<parallel>], iteration_bounds = array<i64: 4>, scalar_prefetch = 0 : i64, scratch_operands = 0 : i64, tpu.core_type = #tpu.core_type<tc>, window_params = [{transform_indices = @transform_0, window_bounds = array<i64: 8, 64>}, {pipeline_mode = #tpu.pipeline_mode<synchronous>, transform_indices = @transform_1, window_bounds = array<i64: 64, 32>}, {pipeline_mode = #tpu.pipeline_mode<synchronous>, transform_indices = @transform_2, window_bounds = array<i64: 1, 32>}, {transform_indices = @transform_3, window_bounds = array<i64: 8, 32>}]} {
    %c0 = arith.constant 0 : index
    %c0_0 = arith.constant 0 : index
    %0 = vector.load %arg1[%c0, %c0_0] : memref<8x64xf32, #tpu.memory_space<vmem>>, vector<8x64xf32>
    %c0_1 = arith.constant 0 : index
    %c0_2 = arith.constant 0 : index
    %1 = vector.load %arg2[%c0_1, %c0_2] : memref<64x32xf32, #tpu.memory_space<vmem>>, vector<64x32xf32>
    %cst = arith.constant dense<0.000000e+00> : vector<8x32xf32>
    %2 = tpu.matmul %0, %1, %cst {dimension_numbers = #tpu.dot_dimension_numbers<[1], [0], [0], [1], [0, 0, 1, 1], [], []>} : vector<8x64xf32>, vector<64x32xf32>, vector<8x32xf32> -> vector<8x32xf32>
    %c0_3 = arith.constant 0 : index
    %c0_4 = arith.constant 0 : index
    %3 = vector.load %arg3[%c0_3, %c0_4] : memref<1x32xf32, #tpu.memory_space<vmem>>, vector<1x32xf32>
    %4 = vector.broadcast %3 : vector<1x32xf32> to vector<8x32xf32>
    %5 = arith.addf %2, %4 : vector<8x32xf32>
    %c0_5 = arith.constant 0 : index
    %c0_6 = arith.constant 0 : index
    %6 = vector.load %arg4[%c0_5, %c0_6] : memref<8x32xf32, #tpu.memory_space<vmem>>, vector<8x32xf32>
    tpu.vector_store %arg4[%c0_5, %c0_6], %5 {strides = array<i32>} : memref<8x32xf32, #tpu.memory_space<vmem>>, vector<8x32xf32>,
    return
  }
  func.func @transform_0(%arg0: i32) -> (i32, i32) {
    %c0_i32 = arith.constant 0 : i32
    %c0_i32_0 = arith.constant 0 : i32
    return %arg0, %c0_i32 : i32, i32
  }
  func.func @transform_1(%arg0: i32) -> (i32, i32) {
    %c0_i32 = arith.constant 0 : i32
    %c0_i32_0 = arith.constant 0 : i32
    %c0_i32_1 = arith.constant 0 : i32
    return %c0_i32, %c0_i32_0 : i32, i32
  }
  func.func @transform_2(%arg0: i32) -> (i32, i32) {
    %c0_i32 = arith.constant 0 : i32
    %c0_i32_0 = arith.constant 0 : i32
    %c0_i32_1 = arith.constant 0 : i32
    return %c0_i32, %c0_i32_0 : i32, i32
  }
  func.func @transform_3(%arg0: i32) -> (i32, i32) {
    %c0_i32 = arith.constant 0 : i32
    %c0_i32_0 = arith.constant 0 : i32
    return %arg0, %c0_i32 : i32, i32
  }
}

</mosaic_0001>

<bundles_post_ra>
// kernel: patch_embedding.1
= control target key start
LH: loop header
LB: loop body
LE: loop exit
PB: predicated region body
PF: predicated region fallthrough
CT: control target
= control target key end

     0   :  { %8 = vsyncpa [#allocation3], 0  ;;  %s527_s0 = inlined_call_operand.vmem [shape: f32[32,64], index: 0, kind: input, shape index: {}]   ;;  %s528_s1 = inlined_call_operand.vmem [shape: f32[64,32], index: 1, kind: input, shape index: {}]   ;;  %s529_s2 = inlined_call_operand.vmem [shape: f32[1,32], index: 2, kind: input, shape index: {}]   ;;  %s530_s3 = inlined_call_operand.hbm [shape: f32[32,32], index: 3, kind: output, shape index: {}]  }
   0x1   :  { %10 = vsyncpa [#allocation3 + $0x1], 0  ;;  %s415_s12 = smov 0   ;;  %s417_s13 = smov 0  }
   0x2   :  { %s419_s14 = smov 0   ;;  %s421_s15 = smov 0  }
   0x3 LB: > { %s436_s16 = sadd.s32 4294967295, %s393_s15   ;;  %s280_s17 = sadd.s32 4294967294, %s393_s15   ;;  %s393_s15 = sphi %s421_s15, %s536_s15   ;;  %s389_s14 = sphi %s419_s14, %s535_s14   ;;  %s385_s13 = sphi %s417_s13, %s534_s13   ;;  %s381_s12 = sphi %s415_s12, %s533_s12  }
   0x4   : > { %s440_s18 = sadd.s32 1, %s393_s15   ;;  %s91_s19 = sadd.s32 1, %s389_s14 }
   0x5   : > { %s88_s20 = ssub.s32 %s393_s15, %s440_s18  ;;  %p101_p0 = scmp.ne.s32.totalorder %s389_s14, %s385_s13 }
   0x6   : > { %p89_p1 = scmp.eq.s32.totalorder %s88_s20, 0  ;;  %p102_p2 = scmp.eq.s32.totalorder %s436_s16, 3 }
   0x7   : > { %p107_p3 = scmp.ne.s32.totalorder %s385_s13, %s381_s12  ;;  %p108_p4 = scmp.eq.s32.totalorder %s280_s17, 3 }
   0x8   : > { %s451_s21 = scalar_select %p89_p1, %s389_s14, %s91_s19  }
   0x9   : > { %p453_p5 = por %p102_p2, %p101_p0  ;;  %p457_p6 = por %p108_p4, %p107_p3 }
   0xa   : > { %p283_p7 = scmp.ge.s32.totalorder %s393_s15, 1  ;;  %p139_p8 = scmp.lt.s32.totalorder %s393_s15, 5 }
   0xc   : > { %p140_p9 = pnand %p283_p7, %p139_p8 }
   0xd   : > { %p162_p10 = scmp.lt.s32.totalorder (!%p140_p9), %s436_s16, 3  ;;  %s159_s27 = sand.u32 (!%p140_p9), 1, %s385_s13  }
   0xe   : > { %143 = sbr.rel (%p140_p9) target bundleno = 166 (0xa6), region = 32  ;;  %s284_s28 = sshll.u32 (!%p140_p9), %s159_s27, 3 }
   0xf   : > { %s288_s29 = sshll.u32 (!%p140_p9), %s436_s16, 3  ;;  %s206_s11 = scalar_lea.sflag (!%p140_p9), [#allocation3], %s159_s27 }
  0x10   : > { %s216_s5 = scalar_lea.hbm (!%p140_p9), %s530_s3, %s288_s29 }
  0x11   : > { %s220_s10 = sshll.u32 (!%p140_p9), %s216_s5, 4  ;;  %s221_s10 = int_to_ptr.hbm [resolvable:$true] %s220_s10 }
  0x13   : > { %v174_v0 = vld [vmem:[%s528_s1 + $0x38] sm:$0xff]  ;;  %v173_v1 = vld [vmem:[%s528_s1 + $0x30] sm:$0xff]  ;;  %v172_v2 = vld [vmem:[%s528_s1 + $0x28] sm:$0xff]  ;;  %s163_s30 = scalar_select %p162_p10, %s436_s16, 3  ;;  %vm179_vm0 = vcmask 523264   ;;  %vm203_vm1 = vcmask 261120  }
  0x14   : > { %191 = vmatpush.msra.mxu0 %v174_v0  ;;  %v171_v3 = vld [vmem:[%s528_s1 + $0x20] sm:$0xff]  ;;  %v170_v4 = vld [vmem:[%s528_s1 + $0x18] sm:$0xff]  ;;  %v169_v5 = vld [vmem:[%s528_s1 + $0x10] sm:$0xff]  ;;  %s345_s16 = sshra.s32 %s221_s10, 4  ;;  %s346_s16 = int_to_ptr.hbm [resolvable:$true] %s345_s16 }
  0x15   : > { %s285_s8 = sshll.u32 %s163_s30, 3  ;;  %v168_v6 = vld [vmem:[%s528_s1 + $0x8] sm:$0xff]  ;;  %v167_v7 = vld [vmem:[%s528_s1] sm:$0xff]  ;;  %s347_s17 = scalar_lea.hbm %s346_s16, 8 }
  0x16   : > { %192 = vmatpush.msra.mxu0 %v173_v1  ;;  %s165_s24 = scalar_lea.vmem %s527_s0, %s285_s8  ;;  %v330_v9 = vld [vmem:[%s529_s2] ss:$0 sm:$0xff]  ;;  %s161_s8 = scalar_lea.vmem [#allocation2], %s284_s28 }
  0x17   : > { %v166_v8 = vld [vmem:[%s165_s24] sm:$0xff]  ;;  %s218_s9 = sshll.u32 %s161_s8, 4  ;;  %p348_p11 = scmp.ne.s32.totalorder %s346_s16, %s347_s17  ;;  %s219_s9 = int_to_ptr.vmem [resolvable:$true] %s218_s9 }
  0x18   : > { %193 = vmatpush.msra.mxu0 %v172_v2  ;;  %s351_s24 = scalar_lea.hbm %s530_s3, 32  ;;  %p352_p0 = scmp.lt.s32.totalorder %s346_s16, %s530_s3 }
  0x19   : > { %p349_p12 = pnand %p348_p11, %p453_p5  ;;  %p353_p1 = scmp.lt.s32.totalorder %s351_s24, %s347_s17 }
  0x1a   : > { %194 = vmatpush.msra.mxu0 %v171_v3 }
  0x1b   : > { %p350_p13 = pneg %p349_p12  ;;  %p354_p2 = por %p353_p1, %p352_p0 }
  0x1c   : > { %195 = vmatpush.msra.mxu0 %v170_v4 }
  0x1d   : > { %p355_p3 = pnand %p354_p2, %p350_p13 }
  0x1e   : > { %196 = vmatpush.msra.mxu0 %v169_v5 }
  0x20   : > { %197 = vmatpush.msra.mxu0 %v168_v6 }
  0x22   : > { %198 = vmatpush.msra.mxu0 %v167_v7 }
  0x23   : > { %286 = vmatmul.msk.f32.vlgmr.msra.gmra.mxu0 %vm179_vm0, %v166_v8 }
  0xa0   : > { %v200_v10 = vpop.f32.mrf.mxu0 }
  0xa1   : > { %v201_v11 = vadd.f32 %v330_v9, %v200_v10 }
  0xa3   : > { %204 = vst.msk [vmem:[%s161_s8] sm:$0xff] %vm203_vm1, %v201_v11 }
  0xa4   : > { %358 = shalt.err (!%p355_p3)
}
  0xa5   : > { %291 = dma.vmem_to_hbm [thread:$0]  (%p453_p5), %s219_s9, 128, %s221_s10, %s206_s11  }
  0xa6 PF: > { %p297_p4 = scmp.ge.s32.totalorder %s393_s15, 2  ;;  %s232_s27 = sand.u32 1, %s381_s12  }
  0xa7   : > { %s233_s28 = scalar_lea.sflag [#allocation3], %s232_s27 }
  0xa8   : > { %p294_p7 = pnand %p297_p4, %p457_p6 }
  0xaa   : > { %p295_p8 = pneg %p294_p7 }
  0xac   : > { %376 = dma.done.wait (%p295_p8), %s233_s28, 128  }
  0xad   : > { %378 = vsyncadd (%p295_p8), %s233_s28, 4294967168  ;;  %p13_p9 = scmp.ge.s32.totalorder %s440_s18, 6   ;;  %s533_s12 = smov %s385_s13 }
  0xae   : > { %s534_s13 = smov %s389_s14  ;;  %s535_s14 = smov %s451_s21 }
  0xaf   : > { %s536_s15 = smov %s440_s18  ;;  %15 = sbr.rel (!%p13_p9) target bundleno = 3 (0x3), region = 67 }
  0xb4   :  { %239 = vsyncpa [#allocation3], 1 }
  0xb5   :  { %241 = vsyncpa [#allocation3 + $0x1], 1 }

</bundles_post_ra>
